<compile_context>
chip_gen: v7x
topology: tpu7x:2x2x1
jax: 0.10.0
libtpu: 0.0.40
codegen_flags: <defaults>
</compile_context>

<pallas_src>
import functools
import math

import jax
import jax.numpy as jnp
from jax.experimental import pallas as pl
from jax.experimental.pallas import tpu as pltpu


def _cdiv(a, b):
    return (a + b - 1) // b


def _round_up(x, m):
    return _cdiv(x, m) * m


def _default_elementwise_dtype():
    """bf16 elementwise on v6e/v7x (bf16 VPU/EUP); f32 elsewhere (v5e etc.)."""
    try:
        kind = jax.devices()[0].device_kind.lower()
    except Exception:
        return jnp.float32
    if ("v6" in kind) or ("v7" in kind) or ("7x" in kind):
        return jnp.bfloat16
    return jnp.float32


def _qkv_attention_kernel(x_ref, wqkv_ref, bqkv_ref, selI_ref, selJ_ref,
                          redI_ref, wfc_ref, bfc_ref, out_ref,
                          *, hid_dim, compute_dtype):
    D = hid_dim
    f32 = jnp.float32
    cd = compute_dtype

    # Fused block-diagonal projection: one (TB, 3D) x (3D, 3D) MXU matmul.
    # The 1/sqrt(D) scale is already folded into the Q block of W/b.
    qkv = jnp.dot(x_ref[...], wqkv_ref[...],
                  preferred_element_type=f32) + bqkv_ref[...]
    Qs = qkv[:, 0 * D:1 * D]          # already scaled by 1/sqrt(D)
    K = qkv[:, 1 * D:2 * D]
    V = qkv[:, 2 * D:3 * D]

    # Algebraic row max of energy[b, i, :] = Qs[b, i] * K[b, :]:
    #   m[b, i] = Qs[b, i] * (Kmax[b] if Qs[b, i] >= 0 else Kmin[b])
    kmax = jnp.max(K, axis=-1, keepdims=True)
    kmin = jnp.min(K, axis=-1, keepdims=True)
    m = Qs * jnp.where(Qs >= 0.0, kmax, kmin)

    # Lane-packed (TB, D*D) workspace built with 0/1 selection matmuls on the
    # idle MXU; column c encodes (i = c // D, j = c % D).
    selI = selI_ref[...]              # (D, D*D): selI[i, c] = (i == c // D)
    selJ = selJ_ref[...]              # (D, D*D): selJ[j, c] = (j == c %  D)
    q_sp = jnp.dot(Qs.astype(cd), selI)   # Qs[b, i(c)]
    m_sp = jnp.dot(m.astype(cd), selI)    # m [b, i(c)]
    k_sp = jnp.dot(K.astype(cd), selJ)    # K [b, j(c)]
    v_sp = jnp.dot(V.astype(cd), selJ)    # V [b, j(c)]

    # Full-lane-density elementwise chain + EUP exp.
    p = jnp.exp(q_sp * k_sp - m_sp)       # (TB, D*D)
    pv = p * v_sp                          # (TB, D*D)

    # Segmented reductions over j on the MXU: redI[c, i] = (c // D == i).
    redI = redI_ref[...]
    denom = jnp.dot(p, redI, preferred_element_type=f32)    # (TB, D)
    numer = jnp.dot(pv, redI, preferred_element_type=f32)   # (TB, D)
    weighted = numer / denom                                 # exact; tiny

    out = jnp.dot(weighted, wfc_ref[...],
                  preferred_element_type=f32) + bfc_ref[...]
    out_ref[...] = out.astype(out_ref.dtype)


def qkv_attention(query, key, value, params, *, tile_b=256,
                  elementwise_dtype=None):
    """query/key/value: (B, D) float32. Returns (B, D) float32."""
    B, D = query.shape
    wq, bq, wk, bk, wv, bv, wfc, bfc = params
    inv_scale = 1.0 / math.sqrt(float(D))

    cd = _default_elementwise_dtype() if elementwise_dtype is None \
        else elementwise_dtype

    # Fused input and block-diagonal projection weights (scale folded into Q).
    x = jnp.concatenate([query, key, value], axis=1)          # (B, 3D)
    wqkv = jnp.zeros((3 * D, 3 * D), jnp.float32)
    wqkv = wqkv.at[0 * D:1 * D, 0 * D:1 * D].set(wq * inv_scale)
    wqkv = wqkv.at[1 * D:2 * D, 1 * D:2 * D].set(wk)
    wqkv = wqkv.at[2 * D:3 * D, 2 * D:3 * D].set(wv)
    bqkv = jnp.concatenate([bq * inv_scale, bk, bv], axis=1)   # (1, 3D)

    # 0/1 selection matrices for the lane-packed workspace (built once).
    c = jnp.arange(D * D, dtype=jnp.int32)
    rows = jnp.arange(D, dtype=jnp.int32)[:, None]
    selI = (rows == (c[None, :] // D)).astype(cd)              # (D, D*D)
    selJ = (rows == (c[None, :] % D)).astype(cd)               # (D, D*D)
    redI = jnp.transpose(selI)                                 # (D*D, D)

    # Padding-minimizing batch tiling; even step count balances v7x's 2 TCs.
    nsteps = _cdiv(B, tile_b)
    if nsteps > 1 and nsteps % 2 == 1:
        nsteps += 1
    tb = max(8, _round_up(_cdiv(B, nsteps), 8))
    B_pad = nsteps * tb
    if B_pad != B:
        x = jnp.pad(x, ((0, B_pad - B), (0, 0)))

    kernel = functools.partial(_qkv_attention_kernel, hid_dim=D,
                               compute_dtype=cd)

    row_spec = pl.BlockSpec((tb, 3 * D), lambda b: (b, 0))

    def full(shape):
        return pl.BlockSpec(shape, lambda b: (0, 0))   # grid-invariant block

    out = pl.pallas_call(
        kernel,
        out_shape=jax.ShapeDtypeStruct((B_pad, D), jnp.float32),
        grid=(nsteps,),
        in_specs=[row_spec,
                  full((3 * D, 3 * D)), full((1, 3 * D)),
                  full((D, D * D)), full((D, D * D)), full((D * D, D)),
                  full((D, D)), full((1, D))],
        out_specs=pl.BlockSpec((tb, D), lambda b: (b, 0)),
        compiler_params=pltpu.CompilerParams(
            dimension_semantics=("parallel",),
            vmem_limit_bytes=32 * 1024 * 1024),
    )(x, wqkv, bqkv, selI, selJ, redI, wfc, bfc)
    return out[:B]


def init_params(rng, hid_dim):
    """Deterministic nn.Linear-style init. Weights stored as (in, out)."""
    def linear(k, fan_in, fan_out):
        kw, kb = jax.random.split(k)
        bound = 1.0 / math.sqrt(fan_in)
        w = jax.random.uniform(kw, (fan_in, fan_out), jnp.float32, -bound, bound)
        b = jax.random.uniform(kb, (1, fan_out), jnp.float32, -bound, bound)
        return w, b

    k0, k1, k2, k3 = jax.random.split(rng, 4)
    wq, bq = linear(k0, hid_dim, hid_dim)
    wk, bk = linear(k1, hid_dim, hid_dim)
    wv, bv = linear(k2, hid_dim, hid_dim)
    wfc, bfc = linear(k3, hid_dim, hid_dim)
    return (wq, bq, wk, bk, wv, bv, wfc, bfc)


def reference(query, key, value, params):
    """Pure-JAX reproduction of the PyTorch forward (eval mode, mask=None)."""
    wq, bq, wk, bk, wv, bv, wfc, bfc = params
    D = query.shape[1]
    Q = query @ wq + bq[0]
    K = key @ wk + bk[0]
    V = value @ wv + bv[0]
    energy = jnp.einsum('bi,bj->bij', Q, K) / jnp.sqrt(jnp.float32(D))
    attn = jax.nn.softmax(energy, axis=-1)
    weighted = jnp.einsum('bij,bj->bi', attn, V)
    return weighted @ wfc + bfc[0]


if __name__ == "__main__":
    hid_dim = 32
    batch = 2

    root = jax.random.PRNGKey(0)
    kq, kk, kv, kp = jax.random.split(root, 4)
    query = jax.random.normal(kq, (batch, hid_dim), jnp.float32)
    key_in = jax.random.normal(kk, (batch, hid_dim), jnp.float32)
    value = jax.random.normal(kv, (batch, hid_dim), jnp.float32)
    params = init_params(kp, hid_dim)

    cd = _default_elementwise_dtype()
    tol = 5e-3 if cd == jnp.bfloat16 else 2e-3

    out = jax.block_until_ready(qkv_attention(query, key_in, value, params))
    ref = reference(query, key_in, value, params)
    assert out.shape == (batch, hid_dim)
    assert jnp.allclose(out, ref, atol=tol, rtol=tol)

    # Larger batch: exercises multi-step grid, even step count and the
    # padding-minimizing tile choice (300 -> B_pad=304, tb=152, 2 steps).
    batch2 = 300
    kq2, kk2, kv2 = jax.random.split(jax.random.PRNGKey(1), 3)
    q_big = jax.random.normal(kq2, (batch2, hid_dim), jnp.float32)
    k_big = jax.random.normal(kk2, (batch2, hid_dim), jnp.float32)
    v_big = jax.random.normal(kv2, (batch2, hid_dim), jnp.float32)
    out_big = jax.block_until_ready(qkv_attention(q_big, k_big, v_big, params))
    ref_big = reference(q_big, k_big, v_big, params)
    assert out_big.shape == (batch2, hid_dim)
    assert jnp.allclose(out_big, ref_big, atol=tol, rtol=tol)

    print("KERNEL_OK")
</pallas_src>

<mosaic_0001>
module attributes {stable_mosaic.version = 11 : i64} {
  func.func @_qkv_attention_kernel(%arg0: i32, %arg1: memref<8x96xf32, #tpu.memory_space<vmem>>, %arg2: memref<96x96xf32, #tpu.memory_space<vmem>>, %arg3: memref<1x96xf32, #tpu.memory_space<vmem>>, %arg4: memref<32x1024xf32, #tpu.memory_space<vmem>>, %arg5: memref<32x1024xf32, #tpu.memory_space<vmem>>, %arg6: memref<1024x32xf32, #tpu.memory_space<vmem>>, %arg7: memref<32x32xf32, #tpu.memory_space<vmem>>, %arg8: memref<1x32xf32, #tpu.memory_space<vmem>>, %arg9: memref<8x32xf32, #tpu.memory_space<vmem>>) attributes {dimension_semantics = [#tpu.dimension_semantics<parallel>], iteration_bounds = array<i64: 1>, scalar_prefetch = 0 : i64, scratch_operands = 0 : i64, tpu.core_type = #tpu.core_type<tc>, window_params = [{transform_indices = @transform_0, window_bounds = array<i64: 8, 96>}, {pipeline_mode = #tpu.pipeline_mode<synchronous>, transform_indices = @transform_1, window_bounds = array<i64: 96, 96>}, {pipeline_mode = #tpu.pipeline_mode<synchronous>, transform_indices = @transform_2, window_bounds = array<i64: 1, 96>}, {pipeline_mode = #tpu.pipeline_mode<synchronous>, transform_indices = @transform_3, window_bounds = array<i64: 32, 1024>}, {pipeline_mode = #tpu.pipeline_mode<synchronous>, transform_indices = @transform_4, window_bounds = array<i64: 32, 1024>}, {pipeline_mode = #tpu.pipeline_mode<synchronous>, transform_indices = @transform_5, window_bounds = array<i64: 1024, 32>}, {pipeline_mode = #tpu.pipeline_mode<synchronous>, transform_indices = @transform_6, window_bounds = array<i64: 32, 32>}, {pipeline_mode = #tpu.pipeline_mode<synchronous>, transform_indices = @transform_7, window_bounds = array<i64: 1, 32>}, {transform_indices = @transform_8, window_bounds = array<i64: 8, 32>}]} {
    %c0 = arith.constant 0 : index
    %c0_0 = arith.constant 0 : index
    %0 = vector.load %arg1[%c0, %c0_0] : memref<8x96xf32, #tpu.memory_space<vmem>>, vector<8x96xf32>
    %c0_1 = arith.constant 0 : index
    %c0_2 = arith.constant 0 : index
    %1 = vector.load %arg2[%c0_1, %c0_2] : memref<96x96xf32, #tpu.memory_space<vmem>>, vector<96x96xf32>
    %cst = arith.constant dense<0.000000e+00> : vector<8x96xf32>
    %2 = tpu.matmul %0, %1, %cst {dimension_numbers = #tpu.dot_dimension_numbers<[1], [0], [0], [1], [0, 0, 1, 1], [], []>} : vector<8x96xf32>, vector<96x96xf32>, vector<8x96xf32> -> vector<8x96xf32>
    %c0_3 = arith.constant 0 : index
    %c0_4 = arith.constant 0 : index
    %3 = vector.load %arg3[%c0_3, %c0_4] : memref<1x96xf32, #tpu.memory_space<vmem>>, vector<1x96xf32>
    %4 = vector.broadcast %3 : vector<1x96xf32> to vector<8x96xf32>
    %5 = arith.addf %2, %4 : vector<8x96xf32>
    %6 = vector.extract_strided_slice %5 {offsets = [0, 0], sizes = [8, 32], strides = [1, 1]} : vector<8x96xf32> to vector<8x32xf32>
    %7 = vector.extract_strided_slice %5 {offsets = [0, 32], sizes = [8, 32], strides = [1, 1]} : vector<8x96xf32> to vector<8x32xf32>
    %8 = vector.extract_strided_slice %5 {offsets = [0, 64], sizes = [8, 32], strides = [1, 1]} : vector<8x96xf32> to vector<8x32xf32>
    %cst_5 = arith.constant dense<0xFF800000> : vector<8xf32>
    %9 = vector.multi_reduction <maximumf>, %7, %cst_5 [1] : vector<8x32xf32> to vector<8xf32>
    %10 = vector.shape_cast %9 : vector<8xf32> to vector<8x1xf32>
    %cst_6 = arith.constant dense<0x7F800000> : vector<8xf32>
    %11 = vector.multi_reduction <minimumf>, %7, %cst_6 [1] : vector<8x32xf32> to vector<8xf32>
    %12 = vector.shape_cast %11 : vector<8xf32> to vector<8x1xf32>
    %cst_7 = arith.constant 0.000000e+00 : f32
    %13 = vector.broadcast %cst_7 : f32 to vector<8x32xf32>
    %14 = arith.cmpf oge, %6, %13 : vector<8x32xf32>
    %15 = vector.shape_cast %10 : vector<8x1xf32> to vector<8x1xf32>
    %16 = vector.broadcast %15 : vector<8x1xf32> to vector<8x32xf32>
    %17 = vector.shape_cast %12 : vector<8x1xf32> to vector<8x1xf32>
    %18 = vector.broadcast %17 : vector<8x1xf32> to vector<8x32xf32>
    %19 = arith.select %14, %16, %18 : vector<8x32xi1>, vector<8x32xf32>
    %20 = arith.mulf %6, %19 : vector<8x32xf32>
    %c0_8 = arith.constant 0 : index
    %c0_9 = arith.constant 0 : index
    %21 = vector.load %arg4[%c0_8, %c0_9] : memref<32x1024xf32, #tpu.memory_space<vmem>>, vector<32x1024xf32>
    %c0_10 = arith.constant 0 : index
    %c0_11 = arith.constant 0 : index
    %22 = vector.load %arg5[%c0_10, %c0_11] : memref<32x1024xf32, #tpu.memory_space<vmem>>, vector<32x1024xf32>
    %cst_12 = arith.constant dense<0.000000e+00> : vector<8x1024xf32>
    %23 = tpu.matmul %6, %21, %cst_12 {dimension_numbers = #tpu.dot_dimension_numbers<[1], [0], [0], [1], [0, 0, 1, 1], [], []>} : vector<8x32xf32>, vector<32x1024xf32>, vector<8x1024xf32> -> vector<8x1024xf32>
    %cst_13 = arith.constant dense<0.000000e+00> : vector<8x1024xf32>
    %24 = tpu.matmul %20, %21, %cst_13 {dimension_numbers = #tpu.dot_dimension_numbers<[1], [0], [0], [1], [0, 0, 1, 1], [], []>} : vector<8x32xf32>, vector<32x1024xf32>, vector<8x1024xf32> -> vector<8x1024xf32>
    %cst_14 = arith.constant dense<0.000000e+00> : vector<8x1024xf32>
    %25 = tpu.matmul %7, %22, %cst_14 {dimension_numbers = #tpu.dot_dimension_numbers<[1], [0], [0], [1], [0, 0, 1, 1], [], []>} : vector<8x32xf32>, vector<32x1024xf32>, vector<8x1024xf32> -> vector<8x1024xf32>
    %cst_15 = arith.constant dense<0.000000e+00> : vector<8x1024xf32>
    %26 = tpu.matmul %8, %22, %cst_15 {dimension_numbers = #tpu.dot_dimension_numbers<[1], [0], [0], [1], [0, 0, 1, 1], [], []>} : vector<8x32xf32>, vector<32x1024xf32>, vector<8x1024xf32> -> vector<8x1024xf32>
    %27 = arith.mulf %23, %25 : vector<8x1024xf32>
    %28 = arith.subf %27, %24 : vector<8x1024xf32>
    %29 = math.exp %28 : vector<8x1024xf32>
    %30 = arith.mulf %29, %26 : vector<8x1024xf32>
    %c0_16 = arith.constant 0 : index
    %c0_17 = arith.constant 0 : index
    %31 = vector.load %arg6[%c0_16, %c0_17] : memref<1024x32xf32, #tpu.memory_space<vmem>>, vector<1024x32xf32>
    %cst_18 = arith.constant dense<0.000000e+00> : vector<8x32xf32>
    %32 = tpu.matmul %29, %31, %cst_18 {dimension_numbers = #tpu.dot_dimension_numbers<[1], [0], [0], [1], [0, 0, 1, 1], [], []>} : vector<8x1024xf32>, vector<1024x32xf32>, vector<8x32xf32> -> vector<8x32xf32>
    %cst_19 = arith.constant dense<0.000000e+00> : vector<8x32xf32>
    %33 = tpu.matmul %30, %31, %cst_19 {dimension_numbers = #tpu.dot_dimension_numbers<[1], [0], [0], [1], [0, 0, 1, 1], [], []>} : vector<8x1024xf32>, vector<1024x32xf32>, vector<8x32xf32> -> vector<8x32xf32>
    %34 = arith.divf %33, %32 : vector<8x32xf32>
    %c0_20 = arith.constant 0 : index
    %c0_21 = arith.constant 0 : index
    %35 = vector.load %arg7[%c0_20, %c0_21] : memref<32x32xf32, #tpu.memory_space<vmem>>, vector<32x32xf32>
    %cst_22 = arith.constant dense<0.000000e+00> : vector<8x32xf32>
    %36 = tpu.matmul %34, %35, %cst_22 {dimension_numbers = #tpu.dot_dimension_numbers<[1], [0], [0], [1], [0, 0, 1, 1], [], []>} : vector<8x32xf32>, vector<32x32xf32>, vector<8x32xf32> -> vector<8x32xf32>
    %c0_23 = arith.constant 0 : index
    %c0_24 = arith.constant 0 : index
    %37 = vector.load %arg8[%c0_23, %c0_24] : memref<1x32xf32, #tpu.memory_space<vmem>>, vector<1x32xf32>
    %38 = vector.broadcast %37 : vector<1x32xf32> to vector<8x32xf32>
    %39 = arith.addf %36, %38 : vector<8x32xf32>
    %c0_25 = arith.constant 0 : index
    %c0_26 = arith.constant 0 : index
    %40 = vector.load %arg9[%c0_25, %c0_26] : memref<8x32xf32, #tpu.memory_space<vmem>>, vector<8x32xf32>
    tpu.vector_store %arg9[%c0_25, %c0_26], %39 {strides = array<i32>} : memref<8x32xf32, #tpu.memory_space<vmem>>, vector<8x32xf32>,
    return
  }
  func.func @transform_0(%arg0: i32) -> (i32, i32) {
    %c0_i32 = arith.constant 0 : i32
    %c0_i32_0 = arith.constant 0 : i32
    return %arg0, %c0_i32 : i32, i32
  }
  func.func @transform_1(%arg0: i32) -> (i32, i32) {
    %c0_i32 = arith.constant 0 : i32
    %c0_i32_0 = arith.constant 0 : i32
    %c0_i32_1 = arith.constant 0 : i32
    return %c0_i32, %c0_i32_0 : i32, i32
  }
  func.func @transform_2(%arg0: i32) -> (i32, i32) {
    %c0_i32 = arith.constant 0 : i32
    %c0_i32_0 = arith.constant 0 : i32
    %c0_i32_1 = arith.constant 0 : i32
    return %c0_i32, %c0_i32_0 : i32, i32
  }
  func.func @transform_3(%arg0: i32) -> (i32, i32) {
    %c0_i32 = arith.constant 0 : i32
    %c0_i32_0 = arith.constant 0 : i32
    %c0_i32_1 = arith.constant 0 : i32
    return %c0_i32, %c0_i32_0 : i32, i32
  }
  func.func @transform_4(%arg0: i32) -> (i32, i32) {
    %c0_i32 = arith.constant 0 : i32
    %c0_i32_0 = arith.constant 0 : i32
    %c0_i32_1 = arith.constant 0 : i32
    return %c0_i32, %c0_i32_0 : i32, i32
  }
  func.func @transform_5(%arg0: i32) -> (i32, i32) {
    %c0_i32 = arith.constant 0 : i32
    %c0_i32_0 = arith.constant 0 : i32
    %c0_i32_1 = arith.constant 0 : i32
    return %c0_i32, %c0_i32_0 : i32, i32
  }
  func.func @transform_6(%arg0: i32) -> (i32, i32) {
    %c0_i32 = arith.constant 0 : i32
    %c0_i32_0 = arith.constant 0 : i32
    %c0_i32_1 = arith.constant 0 : i32
    return %c0_i32, %c0_i32_0 : i32, i32
  }
  func.func @transform_7(%arg0: i32) -> (i32, i32) {
    %c0_i32 = arith.constant 0 : i32
    %c0_i32_0 = arith.constant 0 : i32
    %c0_i32_1 = arith.constant 0 : i32
    return %c0_i32, %c0_i32_0 : i32, i32
  }
  func.func @transform_8(%arg0: i32) -> (i32, i32) {
    %c0_i32 = arith.constant 0 : i32
    %c0_i32_0 = arith.constant 0 : i32
    return %arg0, %c0_i32 : i32, i32
  }
}

</mosaic_0001>

<bundles_post_ra>
// kernel: tpu_custom_call.1
= control target key start
LH: loop header
LB: loop body
LE: loop exit
PB: predicated region body
PF: predicated region fallthrough
CT: control target
= control target key end

     0   :  { %v4100_v3 = vmov 0.0|0.0   ;;  %vm2991_vm0 = vmmov 0   ;;  %v4099_v6 = vmov 0.0   ;;  %s4090_s0 = inlined_call_operand.vmem [shape: f32[8,96], index: 0, kind: input, shape index: {}]   ;;  %s4091_s1 = inlined_call_operand.vmem [shape: f32[96,96], index: 1, kind: input, shape index: {}]   ;;  %s4092_s2 = inlined_call_operand.vmem [shape: f32[1,96], index: 2, kind: input, shape index: {}]   ;;  %s4093_s3 = inlined_call_operand.vmem [shape: f32[32,1024], index: 3, kind: input, shape index: {}]   ;;  %s4094_s4 = inlined_call_operand.vmem [shape: f32[32,1024], index: 4, kind: input, shape index: {}]   ;;  %s4095_s5 = inlined_call_operand.vmem [shape: f32[1024,32], index: 5, kind: input, shape index: {}]   ;;  %s4096_s6 = inlined_call_operand.vmem [shape: f32[32,32], index: 6, kind: input, shape index: {}]   ;;  %s4097_s7 = inlined_call_operand.vmem [shape: f32[1,32], index: 7, kind: input, shape index: {}]   ;;  %s4098_s8 = inlined_call_operand.hbm [shape: f32[8,32], index: 8, kind: output, shape index: {}]  }
   0x1   :  { %v31_v0 = vld [vmem:[%s4091_s1] sm:$0xff]  ;;  %v32_v1 = vld [vmem:[%s4091_s1 + $0x8] sm:$0xff]  ;;  %v33_v2 = vld [vmem:[%s4091_s1 + $0x10] sm:$0xff]  ;;  %2534 = vmatprep.subr.bf16.mxu0 %v4100_v3  ;;  %2520 = vmatprep.mubr.msk.f32.mxu0 %vm2991_vm0, %v4099_v6 }
   0x2   :  { %v2535_v4 = vpack.c.bf16 %v32_v1, %v31_v0  ;;  %v34_v5 = vld [vmem:[%s4091_s1 + $0x18] sm:$0xff]  ;;  %266 = vmatprep.mubr.f32.mxu1 %v4099_v6  ;;  %v35_v8 = vld [vmem:[%s4091_s1 + $0x20] sm:$0xff]  ;;  %v36_v9 = vld [vmem:[%s4091_s1 + $0x28] sm:$0xff] }
   0x3   :  { %v2538_v7 = vpack.c.bf16 %v34_v5, %v33_v2  ;;  %v135_v10 = vld [vmem:[%s4093_s3 + $0x8] sm:$0xff]  ;;  %v134_v13 = vld [vmem:[%s4093_s3] sm:$0xff]  ;;  %v2541_v16 = vpack.c.bf16 %v36_v9, %v35_v8  ;;  %v37_v20 = vld [vmem:[%s4091_s1 + $0x30] sm:$0xff] }
   0x4   :  { %2536 = vmatpush3.bf16.msra.mxu0 %v2535_v4  ;;  %v143_v11 = vld [vmem:[%s4093_s3 + $0x48] sm:$0xff]  ;;  %v142_v14 = vld [vmem:[%s4093_s3 + $0x40] sm:$0xff]  ;;  %v38_v21 = vld [vmem:[%s4091_s1 + $0x38] sm:$0xff] }
   0x5   :  { %2537 = vmatprep.subr.bf16.mxu0 %v4100_v3  ;;  %v3070_v12 = vpack.c.bf16 %v143_v11, %v135_v10  ;;  %v3078_v15 = vpack.c.bf16 %v142_v14, %v134_v13  ;;  %v151_v17 = vld [vmem:[%s4093_s3 + $0x88] sm:$0xff]  ;;  %v150_v19 = vld [vmem:[%s4093_s3 + $0x80] sm:$0xff] }
   0x6   :  { %v159_v18 = vld [vmem:[%s4093_s3 + $0xc8] sm:$0xff]  ;;  %v158_v23 = vld [vmem:[%s4093_s3 + $0xc0] sm:$0xff] }
   0x7   :  { %2553 = vmatprep.subr.bf16.mxu1 %v3070_v12  ;;  %v3098_v22 = vpack.c.bf16 %v159_v18, %v151_v17  ;;  %v3103_v24 = vpack.c.bf16 %v158_v23, %v150_v19 }
   0x8   :  { %2539 = vmatpush3.bf16.msra.mxu0 %v2538_v7  ;;  %2555 = vmatpush1.bf16.msra.mxu1 %v3078_v15 }
   0x9   :  { %2540 = vmatprep.subr.bf16.mxu0 %v4100_v3 }
   0xa   :  { %13 = vsyncpa [#allocation3], 0  ;;  %2557 = vmatprep.subr.bf16.mxu1 %v3098_v22  ;;  %v2544_v25 = vpack.c.bf16 %v38_v21, %v37_v20  ;;  %v39_v26 = vld [vmem:[%s4091_s1 + $0x40] sm:$0xff]  ;;  %v40_v27 = vld [vmem:[%s4091_s1 + $0x48] sm:$0xff]  ;;  %vm50_vm1 = vcmask 785408   ;;  %vm198_vm2 = vcmask 261120  }
   0xb   :  { %v2547_v28 = vpack.c.bf16 %v40_v27, %v39_v26  ;;  %v41_v29 = vld [vmem:[%s4091_s1 + $0x50] sm:$0xff]  ;;  %v42_v30 = vld [vmem:[%s4091_s1 + $0x58] sm:$0xff]  ;;  %v30_v39 = vld [vmem:[%s4090_s0] sm:$0xff]  ;;  %vm124_vm3 = vcmask 523520   ;;  %s2993_s15 = smov 96   ;;  %s2994_s23 = smov 64  }
   0xc   :  { %2542 = vmatpush3.bf16.msra.mxu0 %v2541_v16  ;;  %2559 = vmatpush1.bf16.msra.mxu1 %v3103_v24  ;;  %v141_v31 = vld [vmem:[%s4093_s3 + $0x38] sm:$0xff]  ;;  %v2550_v33 = vpack.c.bf16 %v42_v30, %v41_v29  ;;  %v140_v35 = vld [vmem:[%s4093_s3 + $0x30] sm:$0xff]  ;;  %v2178_v50 = vld [vmem:[%s4092_s2] ss:$0 sm:$0xff]  ;;  %s2995_s2 = smov [#allocation2]  }
   0xd   :  { %2543 = vmatprep.subr.bf16.mxu0 %v4100_v3  ;;  %v149_v32 = vld [vmem:[%s4093_s3 + $0x78] sm:$0xff]  ;;  %v148_v36 = vld [vmem:[%s4093_s3 + $0x70] sm:$0xff]  ;;  %v139_v60 = vld [vmem:[%s4093_s3 + $0x28] sm:$0xff]  ;;  %s2170_s10 = sshll.u32 %s2995_s2, 4  ;;  %s2171_s10 = int_to_ptr.vmem [resolvable:$true] %s2170_s10 }
   0xe   :  { %v3128_v34 = vpack.c.bf16 %v149_v32, %v141_v31  ;;  %v157_v37 = vld [vmem:[%s4093_s3 + $0xb8] sm:$0xff]  ;;  %v3145_v40 = vpack.c.bf16 %v148_v36, %v140_v35  ;;  %v156_v42 = vld [vmem:[%s4093_s3 + $0xb0] sm:$0xff]  ;;  %v147_v61 = vld [vmem:[%s4093_s3 + $0x68] sm:$0xff]  ;;  %s2966_s11 = scalar_lea.vmem %s2171_s10, 128  ;;  %p2971_p1 = scmp.lt.s32.totalorder %s2171_s10, %s2171_s10 }
   0xf   :  { %v165_v38 = vld [vmem:[%s4093_s3 + $0xf8] sm:$0xff]  ;;  %v164_v43 = vld [vmem:[%s4093_s3 + $0xf0] sm:$0xff]  ;;  %v2568_v0 = vpack.c.bf16 %v147_v61, %v139_v60  ;;  %v138_v1 = vld [vmem:[%s4093_s3 + $0x20] sm:$0xff]  ;;  %p2967_p0 = scmp.ne.s32.totalorder %s2171_s10, %s2966_s11  ;;  %p2972_p2 = scmp.lt.s32.totalorder %s2966_s11, %s2966_s11 }
  0x10   :  { %2545 = vmatpush3.bf16.msra.mxu0 %v2544_v25  ;;  %v3148_v41 = vpack.c.bf16 %v165_v38, %v157_v37  ;;  %v3159_v44 = vpack.c.bf16 %v164_v43, %v156_v42  ;;  %v137_v45 = vld [vmem:[%s4093_s3 + $0x18] sm:$0xff]  ;;  %v136_v48 = vld [vmem:[%s4093_s3 + $0x10] sm:$0xff]  ;;  %v146_v2 = vld [vmem:[%s4093_s3 + $0x60] sm:$0xff] }
  0x11   :  { %2546 = vmatprep.subr.bf16.mxu0 %v4100_v3  ;;  %v145_v46 = vld [vmem:[%s4093_s3 + $0x58] sm:$0xff]  ;;  %v144_v49 = vld [vmem:[%s4093_s3 + $0x50] sm:$0xff]  ;;  %v155_v4 = vld [vmem:[%s4093_s3 + $0xa8] sm:$0xff]  ;;  %v2570_v8 = vpack.c.bf16 %v146_v2, %v138_v1  ;;  %p2973_p3 = por %p2972_p2, %p2971_p1 }
  0x12   :  { %v2560_v47 = vpack.c.bf16 %v145_v46, %v137_v45  ;;  %v153_v51 = vld [vmem:[%s4093_s3 + $0x98] sm:$0xff]  ;;  %v2562_v54 = vpack.c.bf16 %v144_v49, %v136_v48  ;;  %v152_v58 = vld [vmem:[%s4093_s3 + $0x90] sm:$0xff]  ;;  %v163_v5 = vld [vmem:[%s4093_s3 + $0xe8] sm:$0xff] }
  0x13   :  { %v161_v52 = vld [vmem:[%s4093_s3 + $0xd8] sm:$0xff]  ;;  %v160_v59 = vld [vmem:[%s4093_s3 + $0xd0] sm:$0xff]  ;;  %v2572_v9 = vpack.c.bf16 %v163_v5, %v155_v4  ;;  %v154_v10 = vld [vmem:[%s4093_s3 + $0xa0] sm:$0xff]  ;;  %p2974_p4 = pnand %p2973_p3, %p2967_p0 }
  0x14   :  { %2548 = vmatpush3.bf16.msra.mxu0 %v2547_v28  ;;  %2561 = vmatprep.subr.bf16.mxu1 %v2560_v47  ;;  %v2564_v57 = vpack.c.bf16 %v161_v52, %v153_v51  ;;  %v2566_v63 = vpack.c.bf16 %v160_v59, %v152_v58  ;;  %v162_v11 = vld [vmem:[%s4093_s3 + $0xe0] sm:$0xff]  ;;  %v169_v19 = vld [vmem:[%s4094_s4 + $0x18] sm:$0xff]  ;;  %v168_v25 = vld [vmem:[%s4094_s4 + $0x10] sm:$0xff] }
  0x15   :  { %2549 = vmatprep.subr.bf16.mxu0 %v4100_v3  ;;  %v2574_v13 = vpack.c.bf16 %v162_v11, %v154_v10  ;;  %v177_v20 = vld [vmem:[%s4094_s4 + $0x58] sm:$0xff]  ;;  %v166_v21 = vld [vmem:[%s4094_s4] sm:$0xff]  ;;  %v176_v26 = vld [vmem:[%s4094_s4 + $0x50] sm:$0xff] }
  0x16   :  { %v183_v27 = vld [vmem:[%s4094_s4 + $0x88] sm:$0xff]  ;;  %v185_v29 = vld [vmem:[%s4094_s4 + $0x98] sm:$0xff]  ;;  %v2626_v32 = vpack.c.bf16 %v176_v26, %v168_v25  ;;  %v184_v37 = vld [vmem:[%s4094_s4 + $0x90] sm:$0xff] }
  0x17   :  { %v191_v28 = vld [vmem:[%s4094_s4 + $0xc8] sm:$0xff]  ;;  %v193_v30 = vld [vmem:[%s4094_s4 + $0xd8] sm:$0xff]  ;;  %v192_v38 = vld [vmem:[%s4094_s4 + $0xd0] sm:$0xff] }
  0x18   :  { %2551 = vmatpush3.bf16.msra.mxu0 %v2550_v33  ;;  %v182_v33 = vld [vmem:[%s4094_s4 + $0x80] sm:$0xff]  ;;  %v2620_v35 = vpack.c.bf16 %v191_v28, %v183_v27  ;;  %v2628_v36 = vpack.c.bf16 %v193_v30, %v185_v29  ;;  %v181_v42 = vld [vmem:[%s4094_s4 + $0x78] sm:$0xff]  ;;  %v172_v49 = vld [vmem:[%s4094_s4 + $0x30] sm:$0xff] }
  0x19   :  { %2577 = vmatprep.subr.bf16.mxu0 %v3128_v34  ;;  %v170_v45 = vld [vmem:[%s4094_s4 + $0x20] sm:$0xff]  ;;  %v187_v51 = vld [vmem:[%s4094_s4 + $0xa8] sm:$0xff]  ;;  %v188_v61 = vld [vmem:[%s4094_s4 + $0xb0] sm:$0xff] }
  0x1a   :  { %v178_v46 = vld [vmem:[%s4094_s4 + $0x60] sm:$0xff]  ;;  %v195_v52 = vld [vmem:[%s4094_s4 + $0xe8] sm:$0xff]  ;;  %v1408_v26 = vld [vmem:[%s4095_s5 + $0x98] sm:$0xff] }
  0x1b   :  { %2521 = vmatmul.mubr.msk.f32.vlgmr.msra.gmra.mrb[0].mxu0 %vm50_vm1, %v30_v39  ;;  %v171_v39 = vld [vmem:[%s4094_s4 + $0x28] sm:$0xff]  ;;  %v2636_v58 = vpack.c.bf16 %v195_v52, %v187_v51  ;;  %v194_v60 = vld [vmem:[%s4094_s4 + $0xe0] sm:$0xff]  ;;  %v1439_v27 = vld [vmem:[%s4095_s5 + $0x190] sm:$0xff] }
  0x1c   :  { %2579 = vmatpush1.bf16.msra.mxu0 %v3145_v40  ;;  %479 = vmatprep.mubr.f32.mxu0 %v4099_v6  ;;  %v1440_v28 = vld [vmem:[%s4095_s5 + $0x198] sm:$0xff]  ;;  %v1443_v51 = vld [vmem:[%s4095_s5 + $0x1b0] sm:$0xff] }
  0x1d   :  { %2581 = vmatprep.subr.bf16.mxu0 %v3148_v41  ;;  %v3426_v30 = vpack.c.bf16 %v1440_v28, %v1439_v27  ;;  %v1444_v52 = vld [vmem:[%s4095_s5 + $0x1b8] sm:$0xff]  ;;  %v1399_v28 = vld [vmem:[%s4095_s5 + $0x50] sm:$0xff] }
  0x1e   :  { %v1448_v27 = vld [vmem:[%s4095_s5 + $0x1d8] sm:$0xff] }
  0x20   :  { %2583 = vmatpush1.bf16.msra.mxu0 %v3159_v44 }
  0x21   :  { %2593 = vmatprep.subr.bf16.mxu0 %v2560_v47 }
  0xee   :  { %v120_v53 = vpop.f32.mrb[0].mxu0 }
  0xef   :  { %v121_v55 = vadd.f32 %v2178_v50, %v120_v53  ;;  %v2522_v56 = vpop.f32.mrb[1].mxu0  ;;  %v180_v50 = vld [vmem:[%s4094_s4 + $0x70] sm:$0xff]  ;;  %v189_v53 = vld [vmem:[%s4094_s4 + $0xb8] sm:$0xff] }
  0xf0   :  { %v2642_v56 = vpack.c.bf16 %v180_v50, %v172_v49  ;;  %v1412_v50 = vld [vmem:[%s4095_s5 + $0xb8] sm:$0xff] }
  0xf1   :  { %773 = vrot.lane.b32.xlu1 %v121_v55, %s2993_s15  ;;  %2180 = vmatmul.mubr.msk.f32.vlgmr.msra.gmra.mrb[0].mxu1 %vm198_vm2, %v121_v55  ;;  %v125_v62 = vsel %vm124_vm3, %v121_v55, -inf  ;;  %v128_v7 = vsel %vm124_vm3, %v121_v55, inf  ;;  %vm131_vm4 = vcmp.ge.f32.partialorder %v121_v55, 0.0 }
  0xf2   :  { %2563 = vmatpush1.bf16.msra.mxu1 %v2562_v54  ;;  %2183 = vmatmul.mubr.msk.f32.vlgmr.msra.gmra.mrb[2].mxu0 %vm198_vm2, %v121_v55 }
  0xf3   :  { %126 = vmax.xlane.f32.xlu0 %v125_v62  ;;  %2565 = vmatprep.subr.bf16.mxu1 %v2564_v57  ;;  %v196_v62 = vld [vmem:[%s4094_s4 + $0xf0] sm:$0xff] }
  0xf4   :  { %337 = vmatprep.mubr.f32.mxu1 %v4099_v6  ;;  %2595 = vmatpush1.bf16.msra.mxu0 %v2562_v54  ;;  %v197_v54 = vld [vmem:[%s4094_s4 + $0xf8] sm:$0xff]  ;;  %v2646_v1 = vpack.c.bf16 %v196_v62, %v188_v61  ;;  %v1413_v61 = vld [vmem:[%s4095_s5 + $0xc0] sm:$0xff]  ;;  %v1414_v62 = vld [vmem:[%s4095_s5 + $0xc8] sm:$0xff] }
  0xf5   :  { %1061 = vrot.lane.b32.xlu1 %v121_v55, %s2994_s23  ;;  %2597 = vmatprep.subr.bf16.mxu0 %v2564_v57  ;;  %v186_v57 = vld [vmem:[%s4094_s4 + $0xa0] sm:$0xff]  ;;  %v2644_v59 = vpack.c.bf16 %v197_v54, %v189_v53  ;;  %v3498_v54 = vpack.c.bf16 %v1444_v52, %v1443_v51 }
  0xf6   :  { %2567 = vmatpush1.bf16.msra.mxu1 %v2566_v63  ;;  %624 = vmatprep.mubr.f32.mxu0 %v4099_v6  ;;  %v1433_v52 = vld [vmem:[%s4095_s5 + $0x160] sm:$0xff] }
  0xf7   :  { %129 = vmin.xlane.f32.xlu0 %v128_v7  ;;  %2569 = vmatprep.subr.bf16.mxu1 %v2568_v0 }
  0xf8   :  { %2599 = vmatpush1.bf16.msra.mxu0 %v2566_v63 }
  0xf9   :  { %2181 = vmatmul.mubr.msk.f32.vlgmr.msra.gmra.mrb[2].mxu1 %vm198_vm2, %v121_v55  ;;  %2609 = vmatprep.subr.bf16.mxu0 %v3128_v34  ;;  %v190_v34 = vld [vmem:[%s4094_s4 + $0xc0] sm:$0xff] }
  0xfa   :  { %2571 = vmatpush1.bf16.msra.mxu1 %v2570_v8  ;;  %408 = vmatprep.mubr.f32.mxu1 %v4099_v6  ;;  %v2622_v43 = vpack.c.bf16 %v190_v34, %v182_v33  ;;  %v1423_v33 = vld [vmem:[%s4095_s5 + $0x110] sm:$0xff] }
  0xfb   :  { %2573 = vmatprep.subr.bf16.mxu1 %v2572_v9 }
  0xfe   :  { %2575 = vmatpush1.bf16.msra.mxu1 %v2574_v13 }
  0xff   :  { %2585 = vmatprep.subr.bf16.mxu1 %v3070_v12  ;;  %v167_v12 = vld [vmem:[%s4094_s4 + $0x8] sm:$0xff] }
 0x101   :  { %2182 = vmatmul.mubr.msk.f32.vlgmr.msra.gmra.mrb[4].mxu1 %vm198_vm2, %v121_v55 }
 0x102   :  { %2587 = vmatpush1.bf16.msra.mxu1 %v3078_v15  ;;  %553 = vmatprep.mubr.f32.mxu1 %v4099_v6  ;;  %v175_v15 = vld [vmem:[%s4094_s4 + $0x48] sm:$0xff] }
 0x103   :  { %2589 = vmatprep.subr.bf16.mxu1 %v3098_v22  ;;  %v174_v22 = vld [vmem:[%s4094_s4 + $0x40] sm:$0xff]  ;;  %v3250_v23 = vpack.c.bf16 %v175_v15, %v167_v12  ;;  %v1438_v12 = vld [vmem:[%s4095_s5 + $0x188] sm:$0xff] }
 0x104   :  { %v3275_v31 = vpack.c.bf16 %v174_v22, %v166_v21  ;;  %v1389_v15 = vld [vmem:[%s4095_s5] sm:$0xff] }
 0x105   :  { %v1421_v22 = vld [vmem:[%s4095_s5 + $0x100] sm:$0xff] }
 0x106   :  { %2591 = vmatpush1.bf16.msra.mxu1 %v3103_v24  ;;  %v3252_v24 = vpack.c.bf16 %v177_v20, %v169_v19  ;;  %v1390_v19 = vld [vmem:[%s4095_s5 + $0x8] sm:$0xff] }
 0x107   :  { %2601 = vmatprep.subr.bf16.mxu1 %v2568_v0  ;;  %v2638_v0 = vpack.c.bf16 %v194_v60, %v186_v57  ;;  %v3399_v21 = vpack.c.bf16 %v1390_v19, %v1389_v15  ;;  %v1427_v57 = vld [vmem:[%s4095_s5 + $0x130] sm:$0xff]  ;;  %v1430_v15 = vld [vmem:[%s4095_s5 + $0x148] sm:$0xff] }
 0x163   :  { %v774_v63 = vpop.permute.xlu1 %773 }
 0x167   :  { %v1062_v2 = vpop.permute.xlu1 %1061 }
 0x180   :  { %v127_v14 = vpop.xlane.xlu0 %126 }
 0x184   :  { %v130_v16 = vpop.xlane.xlu0 %129 }
 0x185   :  { %v132_v17 = vsel %vm131_vm4, %v127_v14, %v130_v16  ;;  %v1405_v14 = vld [vmem:[%s4095_s5 + $0x80] sm:$0xff]  ;;  %v1406_v16 = vld [vmem:[%s4095_s5 + $0x88] sm:$0xff] }
 0x186   :  { %v133_v18 = vmul.f32 %v132_v17, %v121_v55  ;;  %v2634_v55 = vpack.c.bf16 %v178_v46, %v170_v45  ;;  %v1437_v17 = vld [vmem:[%s4095_s5 + $0x180] sm:$0xff] }
 0x187   :  { %v3397_v20 = vpack.c.bf16 %v1438_v12, %v1437_v17  ;;  %v1425_v46 = vld [vmem:[%s4095_s5 + $0x120] sm:$0xff] }
 0x188   :  { %2184 = vmatmul.mubr.msk.f32.vlgmr.msra.gmra.mrb[6].mxu1 %vm198_vm2, %v133_v18  ;;  %2185 = vmatmul.mubr.msk.f32.vlgmr.msra.gmra.mrb[4].mxu0 %vm198_vm2, %v133_v18  ;;  %v1429_v12 = vld [vmem:[%s4095_s5 + $0x140] sm:$0xff] }
 0x189   :  { %2603 = vmatpush1.bf16.msra.mxu1 %v2570_v8  ;;  %2611 = vmatpush1.bf16.msra.mxu0 %v3145_v40  ;;  %v179_v40 = vld [vmem:[%s4094_s4 + $0x68] sm:$0xff]  ;;  %v3552_v19 = vpack.c.bf16 %v1430_v15, %v1429_v12  ;;  %v1435_v15 = vld [vmem:[%s4095_s5 + $0x170] sm:$0xff] }
 0x18a   :  { %2605 = vmatprep.subr.bf16.mxu1 %v2572_v9  ;;  %2613 = vmatprep.subr.bf16.mxu0 %v3148_v41  ;;  %v173_v41 = vld [vmem:[%s4094_s4 + $0x38] sm:$0xff]  ;;  %v2632_v47 = vpack.c.bf16 %v179_v40, %v171_v39  ;;  %v1441_v39 = vld [vmem:[%s4095_s5 + $0x1a0] sm:$0xff] }
 0x18b   :  { %695 = vmatprep.mubr.f32.mxu1 %v4099_v6  ;;  %766 = vmatprep.mubr.f32.mxu0 %v4099_v6  ;;  %v2640_v48 = vpack.c.bf16 %v181_v42, %v173_v41  ;;  %v1442_v41 = vld [vmem:[%s4095_s5 + $0x1a8] sm:$0xff]  ;;  %v1393_v42 = vld [vmem:[%s4095_s5 + $0x20] sm:$0xff] }
 0x18d   :  { %2607 = vmatpush1.bf16.msra.mxu1 %v2574_v13  ;;  %2615 = vmatpush1.bf16.msra.mxu0 %v3159_v44  ;;  %v2630_v44 = vpack.c.bf16 %v192_v38, %v184_v37  ;;  %v1409_v37 = vld [vmem:[%s4095_s5 + $0xa0] sm:$0xff]  ;;  %v1410_v38 = vld [vmem:[%s4095_s5 + $0xa8] sm:$0xff] }
 0x18e   :  { %2617 = vmatprep.subr.bf16.mxu1 %v3250_v23  ;;  %2625 = vmatprep.subr.bf16.mxu0 %v3252_v24  ;;  %v3458_v40 = vpack.c.bf16 %v1410_v38, %v1409_v37  ;;  %v1432_v37 = vld [vmem:[%s4095_s5 + $0x158] sm:$0xff] }
 0x190   :  { %2186 = vmatmul.mubr.msk.f32.vlgmr.msra.gmra.mrb[8].mxu1 %vm198_vm2, %v133_v18  ;;  %2187 = vmatmul.mubr.msk.f32.vlgmr.msra.gmra.mrb[6].mxu0 %vm198_vm2, %v133_v18  ;;  %v3386_v18 = vpack.c.bf16 %v1406_v16, %v1405_v14  ;;  %v1398_v14 = vld [vmem:[%s4095_s5 + $0x48] sm:$0xff] }
 0x191   :  { %2619 = vmatpush1.bf16.msra.mxu1 %v3275_v31  ;;  %2627 = vmatpush1.bf16.msra.mxu0 %v2626_v32 }
 0x192   :  { %2621 = vmatprep.subr.bf16.mxu1 %v2620_v35  ;;  %2629 = vmatprep.subr.bf16.mxu0 %v2628_v36 }
 0x193   :  { %841 = vmatprep.mubr.f32.mxu1 %v4099_v6  ;;  %912 = vmatprep.mubr.f32.mxu0 %v4099_v6 }
 0x195   :  { %2623 = vmatpush1.bf16.msra.mxu1 %v2622_v43  ;;  %2631 = vmatpush1.bf16.msra.mxu0 %v2630_v44 }
 0x196   :  { %2633 = vmatprep.subr.bf16.mxu1 %v2632_v47  ;;  %2641 = vmatprep.subr.bf16.mxu0 %v2640_v48 }
 0x198   :  { %2188 = vmatmul.mubr.msk.f32.vlgmr.msra.gmra.mrb[10].mxu1 %vm198_vm2, %v774_v63  ;;  %2189 = vmatmul.mubr.msk.f32.vlgmr.msra.gmra.mrb[8].mxu0 %vm198_vm2, %v774_v63 }
 0x199   :  { %2635 = vmatpush1.bf16.msra.mxu1 %v2634_v55  ;;  %2643 = vmatpush1.bf16.msra.mxu0 %v2642_v56 }
 0x19a   :  { %2637 = vmatprep.subr.bf16.mxu1 %v2636_v58  ;;  %2645 = vmatprep.subr.bf16.mxu0 %v2644_v59 }
 0x19b   :  { %983 = vmatprep.mubr.f32.mxu1 %v4099_v6  ;;  %1054 = vmatprep.mubr.f32.mxu0 %v4099_v6 }
 0x19d   :  { %2639 = vmatpush1.bf16.msra.mxu1 %v2638_v0  ;;  %2647 = vmatpush1.bf16.msra.mxu0 %v2646_v1 }
 0x19e   :  { %2649 = vmatprep.subr.bf16.mxu1 %v3250_v23  ;;  %2657 = vmatprep.subr.bf16.mxu0 %v3252_v24  ;;  %v1422_v23 = vld [vmem:[%s4095_s5 + $0x108] sm:$0xff]  ;;  %v1407_v24 = vld [vmem:[%s4095_s5 + $0x90] sm:$0xff] }
 0x19f   :  { %v3411_v25 = vpack.c.bf16 %v1422_v23, %v1421_v22  ;;  %v3424_v29 = vpack.c.bf16 %v1408_v26, %v1407_v24  ;;  %v1415_v22 = vld [vmem:[%s4095_s5 + $0xd0] sm:$0xff]  ;;  %v1416_v23 = vld [vmem:[%s4095_s5 + $0xd8] sm:$0xff] }
 0x1a0   :  { %2190 = vmatmul.mubr.msk.f32.vlgmr.msra.gmra.mrb[12].mxu1 %vm198_vm2, %v774_v63  ;;  %2191 = vmatmul.mubr.msk.f32.vlgmr.msra.gmra.mrb[10].mxu0 %vm198_vm2, %v774_v63  ;;  %v1445_v63 = vld [vmem:[%s4095_s5 + $0x1c0] sm:$0xff]  ;;  %v1447_v24 = vld [vmem:[%s4095_s5 + $0x1d0] sm:$0xff]  ;;  %v3566_v26 = vpack.c.bf16 %v1416_v23, %v1415_v22  ;;  %v1436_v22 = vld [vmem:[%s4095_s5 + $0x178] sm:$0xff] }
 0x1a1   :  { %2651 = vmatpush1.bf16.msra.mxu1 %v3275_v31  ;;  %2659 = vmatpush1.bf16.msra.mxu0 %v2626_v32  ;;  %v1391_v31 = vld [vmem:[%s4095_s5 + $0x10] sm:$0xff]  ;;  %v1392_v32 = vld [vmem:[%s4095_s5 + $0x18] sm:$0xff]  ;;  %v3660_v23 = vpack.c.bf16 %v1436_v22, %v1435_v15 }
 0x1a2   :  { %2653 = vmatprep.subr.bf16.mxu1 %v2620_v35  ;;  %2661 = vmatprep.subr.bf16.mxu0 %v2628_v36  ;;  %v3440_v34 = vpack.c.bf16 %v1392_v32, %v1391_v31  ;;  %v1424_v35 = vld [vmem:[%s4095_s5 + $0x118] sm:$0xff]  ;;  %v3577_v32 = vpack.c.bf16 %v1448_v27, %v1447_v24  ;;  %v1469_v24 = vld [vmem:[%s4095_s5 + $0x280] sm:$0xff]  ;;  %v1470_v27 = vld [vmem:[%s4095_s5 + $0x288] sm:$0xff] }
 0x1a3   :  { %1129 = vmatprep.mubr.f32.mxu1 %v4099_v6  ;;  %1200 = vmatprep.mubr.f32.mxu0 %v4099_v6  ;;  %v3445_v36 = vpack.c.bf16 %v1424_v35, %v1423_v33  ;;  %v1400_v31 = vld [vmem:[%s4095_s5 + $0x58] sm:$0xff]  ;;  %v1431_v35 = vld [vmem:[%s4095_s5 + $0x150] sm:$0xff]  ;;  %4117 = vst [vmem:[#allocation5_spill] sm:$0xff] %v3660_v23 }
 0x1a4   :  { %v3579_v33 = vpack.c.bf16 %v1400_v31, %v1399_v28  ;;  %v3588_v38 = vpack.c.bf16 %v1432_v37, %v1431_v35  ;;  %v1501_v28 = vld [vmem:[%s4095_s5 + $0x380] sm:$0xff]  ;;  %v3674_v31 = vpack.c.bf16 %v1470_v27, %v1469_v24  ;;  %v1502_v35 = vld [vmem:[%s4095_s5 + $0x388] sm:$0xff] }
 0x1a5   :  { %2655 = vmatpush1.bf16.msra.mxu1 %v2622_v43  ;;  %2663 = vmatpush1.bf16.msra.mxu0 %v2630_v44  ;;  %v1394_v43 = vld [vmem:[%s4095_s5 + $0x28] sm:$0xff]  ;;  %v3469_v44 = vpack.c.bf16 %v1442_v41, %v1441_v39  ;;  %v1417_v39 = vld [vmem:[%s4095_s5 + $0xe0] sm:$0xff]  ;;  %v3679_v37 = vpack.c.bf16 %v1502_v35, %v1501_v28 }
 0x1a6   :  { %2665 = vmatprep.subr.bf16.mxu1 %v2632_v47  ;;  %2673 = vmatprep.subr.bf16.mxu0 %v2640_v48  ;;  %v3471_v45 = vpack.c.bf16 %v1394_v43, %v1393_v42  ;;  %v1426_v47 = vld [vmem:[%s4095_s5 + $0x128] sm:$0xff]  ;;  %v1411_v48 = vld [vmem:[%s4095_s5 + $0xb0] sm:$0xff]  ;;  %v1449_v42 = vld [vmem:[%s4095_s5 + $0x1e0] sm:$0xff]  ;;  %4118 = vst [vmem:[#allocation6_spill] sm:$0xff] %v3674_v31 }
 0x1a7   :  { %v3483_v49 = vpack.c.bf16 %v1426_v47, %v1425_v46  ;;  %v3496_v53 = vpack.c.bf16 %v1412_v50, %v1411_v48  ;;  %v1418_v41 = vld [vmem:[%s4095_s5 + $0xe8] sm:$0xff]  ;;  %v1401_v47 = vld [vmem:[%s4095_s5 + $0x60] sm:$0xff]  ;;  %4119 = vst [vmem:[#allocation7_spill] sm:$0xff] %v3679_v37 }
 0x1a8   :  { %2192 = vmatmul.mubr.msk.f32.vlgmr.msra.gmra.mrb[14].mxu1 %vm198_vm2, %v1062_v2  ;;  %2193 = vmatmul.mubr.msk.f32.vlgmr.msra.gmra.mrb[12].mxu0 %vm198_vm2, %v1062_v2  ;;  %v3602_v43 = vpack.c.bf16 %v1418_v41, %v1417_v39  ;;  %v1450_v46 = vld [vmem:[%s4095_s5 + $0x1e8] sm:$0xff] }
 0x1a9   :  { %2667 = vmatpush1.bf16.msra.mxu1 %v2634_v55  ;;  %2675 = vmatpush1.bf16.msra.mxu0 %v2642_v56  ;;  %v1395_v55 = vld [vmem:[%s4095_s5 + $0x30] sm:$0xff]  ;;  %v1396_v56 = vld [vmem:[%s4095_s5 + $0x38] sm:$0xff]  ;;  %v1402_v48 = vld [vmem:[%s4095_s5 + $0x68] sm:$0xff]  ;;  %v3613_v50 = vpack.c.bf16 %v1450_v46, %v1449_v42 }
 0x1aa   :  { %2669 = vmatprep.subr.bf16.mxu1 %v2636_v58  ;;  %2677 = vmatprep.subr.bf16.mxu0 %v2644_v59  ;;  %v3512_v58 = vpack.c.bf16 %v1396_v56, %v1395_v55  ;;  %v1428_v59 = vld [vmem:[%s4095_s5 + $0x138] sm:$0xff]  ;;  %v3615_v51 = vpack.c.bf16 %v1402_v48, %v1401_v47  ;;  %v1434_v55 = vld [vmem:[%s4095_s5 + $0x168] sm:$0xff] }
 0x1ab   :  { %1271 = vmatprep.mubr.f32.mxu1 %v4099_v6  ;;  %1342 = vmatprep.mubr.f32.mxu0 %v4099_v6  ;;  %v3517_v60 = vpack.c.bf16 %v1428_v59, %v1427_v57  ;;  %v3624_v56 = vpack.c.bf16 %v1434_v55, %v1433_v52  ;;  %v1419_v57 = vld [vmem:[%s4095_s5 + $0xf0] sm:$0xff]  ;;  %v1420_v59 = vld [vmem:[%s4095_s5 + $0xf8] sm:$0xff] }
 0x1ad   :  { %2671 = vmatpush1.bf16.msra.mxu1 %v2638_v0  ;;  %2679 = vmatpush1.bf16.msra.mxu0 %v2646_v1  ;;  %v3530_v0 = vpack.c.bf16 %v1414_v62, %v1413_v61  ;;  %v1446_v1 = vld [vmem:[%s4095_s5 + $0x1c8] sm:$0xff]  ;;  %v1451_v61 = vld [vmem:[%s4095_s5 + $0x1f0] sm:$0xff]  ;;  %v3638_v62 = vpack.c.bf16 %v1420_v59, %v1419_v57 }
 0x1ae   :  { %2681 = vmatprep.subr.bf16.mxu1 %v3386_v18  ;;  %2713 = vmatprep.subr.bf16.mxu0 %v3397_v20  ;;  %v3541_v16 = vpack.c.bf16 %v1446_v1, %v1445_v63  ;;  %v1452_v63 = vld [vmem:[%s4095_s5 + $0x1f8] sm:$0xff]  ;;  %v1403_v1 = vld [vmem:[%s4095_s5 + $0x70] sm:$0xff] }
 0x1b0   :  { %2194 = vmatmul.mubr.msk.f32.vlgmr.msra.gmra.mrb[16].mxu1 %vm198_vm2, %v1062_v2  ;;  %2195 = vmatmul.mubr.msk.f32.vlgmr.msra.gmra.mrb[14].mxu0 %vm198_vm2, %v1062_v2  ;;  %v1397_v2 = vld [vmem:[%s4095_s5 + $0x40] sm:$0xff] }
 0x1b1   :  { %2683 = vmatpush3.bf16.msra.mxu1 %v3399_v21  ;;  %2715 = vmatpush3.bf16.msra.mxu0 %v3411_v25  ;;  %v3543_v17 = vpack.c.bf16 %v1398_v14, %v1397_v2  ;;  %v1404_v2 = vld [vmem:[%s4095_s5 + $0x78] sm:$0xff]  ;;  %v3649_v14 = vpack.c.bf16 %v1452_v63, %v1451_v61 }
 0x1b2   :  { %2685 = vmatprep.subr.bf16.mxu1 %v3424_v29  ;;  %2717 = vmatprep.subr.bf16.mxu0 %v3426_v30  ;;  %v3651_v12 = vpack.c.bf16 %v1404_v2, %v1403_v1 }
 0x1b5   :  { %2687 = vmatpush3.bf16.msra.mxu1 %v3440_v34  ;;  %2719 = vmatpush3.bf16.msra.mxu0 %v3445_v36 }
 0x1b6   :  { %2689 = vmatprep.subr.bf16.mxu1 %v3458_v40  ;;  %2721 = vmatprep.subr.bf16.mxu0 %v3469_v44 }
 0x1b9   :  { %2691 = vmatpush3.bf16.msra.mxu1 %v3471_v45  ;;  %2723 = vmatpush3.bf16.msra.mxu0 %v3483_v49 }
 0x1ba   :  { %2693 = vmatprep.subr.bf16.mxu1 %v3496_v53  ;;  %2725 = vmatprep.subr.bf16.mxu0 %v3498_v54 }
 0x1bd   :  { %2695 = vmatpush3.bf16.msra.mxu1 %v3512_v58  ;;  %2727 = vmatpush3.bf16.msra.mxu0 %v3517_v60 }
 0x1be   :  { %2697 = vmatprep.subr.bf16.mxu1 %v3530_v0  ;;  %2729 = vmatprep.subr.bf16.mxu0 %v3541_v16 }
 0x1c1   :  { %2699 = vmatpush3.bf16.msra.mxu1 %v3543_v17  ;;  %2731 = vmatpush3.bf16.msra.mxu0 %v3552_v19 }
 0x1c2   :  { %2701 = vmatprep.subr.bf16.mxu1 %v3566_v26  ;;  %2733 = vmatprep.subr.bf16.mxu0 %v3577_v32 }
 0x1c4   :  { %v3361_v4 = vpop.f32.mrb[0].mxu1 }
 0x1c5   :  { %v3363_v5 = vpop.f32.mrb[2].mxu0  ;;  %v3365_v7 = vpop.f32.mrb[1].mxu1  ;;  %2703 = vmatpush3.bf16.msra.mxu1 %v3579_v33  ;;  %2735 = vmatpush3.bf16.msra.mxu0 %v3588_v38 }
 0x1c6   :  { %v3367_v8 = vpop.f32.mrb[3].mxu0  ;;  %2705 = vmatprep.subr.bf16.mxu1 %v3602_v43  ;;  %2737 = vmatprep.subr.bf16.mxu0 %v3613_v50 }
 0x1c9   :  { %2707 = vmatpush3.bf16.msra.mxu1 %v3615_v51  ;;  %2739 = vmatpush3.bf16.msra.mxu0 %v3624_v56 }
 0x1ca   :  { %2709 = vmatprep.subr.bf16.mxu1 %v3638_v62  ;;  %2741 = vmatprep.subr.bf16.mxu0 %v3649_v14 }
 0x1cc   :  { %v3369_v9 = vpop.f32.mrb[2].mxu1 }
 0x1cd   :  { %v3371_v10 = vpop.f32.mrb[3].mxu1  ;;  %2711 = vmatpush3.bf16.msra.mxu1 %v3651_v12  ;;  %2743 = vmatpush3.bf16.msra.mxu0 %v3660_v23 }
 0x1ce   :  { %2745 = vmatprep.subr.bf16.mxu1 %v3674_v31  ;;  %2777 = vmatprep.subr.bf16.mxu0 %v3679_v37 }
 0x1d4   :  { %v3373_v11 = vpop.f32.mrb[4].mxu1 }
 0x1d5   :  { %v3375_v13 = vpop.f32.mrb[5].mxu1 }
 0x25b   :  { %v555_v39 = vpop.f32.mrb[6].mxu1  ;;  %v626_v41 = vpop.f32.mrb[4].mxu0 }
 0x25c   :  { %v557_v42 = vpop.f32.mrb[7].mxu1  ;;  %v628_v46 = vpop.f32.mrb[5].mxu0 }
 0x263   :  { %v697_v47 = vpop.f32.mrb[8].mxu1  ;;  %v768_v48 = vpop.f32.mrb[6].mxu0 }
 0x264   :  { %v699_v52 = vpop.f32.mrb[9].mxu1  ;;  %v770_v55 = vpop.f32.mrb[7].mxu0 }
 0x26b   :  { %v843_v57 = vpop.f32.mrb[10].mxu1  ;;  %v914_v59 = vpop.f32.mrb[8].mxu0 }
 0x26c   :  { %v1349_v61 = vmul.f32 %v843_v57, %v3361_v4  ;;  %v1351_v63 = vmul.f32 %v914_v59, %v3369_v9  ;;  %v845_v1 = vpop.f32.mrb[11].mxu1  ;;  %v916_v2 = vpop.f32.mrb[9].mxu0 }
 0x26d   :  { %v1350_v15 = vmul.f32 %v845_v1, %v3365_v7  ;;  %v1352_v22 = vmul.f32 %v916_v2, %v3371_v10  ;;  %v1503_v2 = vld [vmem:[%s4095_s5 + $0x390] sm:$0xff] }
 0x26e   :  { %v1357_v24 = vsub.f32 %v1349_v61, %v555_v39  ;;  %v1359_v27 = vsub.f32 %v1351_v63, %v626_v41 }
 0x26f   :  { %v1358_v28 = vsub.f32 %v1350_v15, %v557_v42  ;;  %v1360_v35 = vsub.f32 %v1352_v22, %v628_v46  ;;  %v1504_v15 = vld [vmem:[%s4095_s5 + $0x398] sm:$0xff] }
 0x270   :  { %v1365_v6 = vmul.f32 1.442695, %v1357_v24  ;;  %v1369_v3 = vmul.f32 1.442695, %v1359_v27 }
 0x271   :  { %v1367_v37 = vmul.f32 1.442695, %v1358_v28  ;;  %v1371_v31 = vmul.f32 1.442695, %v1360_v35 }
 0x272   :  { %2948 = vpow2.f32 %v1365_v6 }
 0x273   :  { %2950 = vpow2.f32 %v1369_v3  ;;  %v985_v23 = vpop.f32.mrb[12].mxu1  ;;  %v1056_v4 = vpop.f32.mrb[10].mxu0 }
 0x274   :  { %2952 = vpow2.f32 %v1367_v37  ;;  %v1353_v9 = vmul.f32 %v985_v23, %v3373_v11  ;;  %v1355_v57 = vmul.f32 %v1056_v4, %v3363_v5  ;;  %v987_v7 = vpop.f32.mrb[13].mxu1  ;;  %v1058_v59 = vpop.f32.mrb[11].mxu0  ;;  %v1453_v5 = vld [vmem:[%s4095_s5 + $0x200] sm:$0xff]  ;;  %v1454_v11 = vld [vmem:[%s4095_s5 + $0x208] sm:$0xff]  ;;  %v1471_v37 = vld [vmem:[%s4095_s5 + $0x290] sm:$0xff] }
 0x275   :  { %2954 = vpow2.f32 %v1371_v31  ;;  %v1354_v10 = vmul.f32 %v987_v7, %v3375_v13  ;;  %v1356_v39 = vmul.f32 %v1058_v59, %v3367_v8  ;;  %v1485_v8 = vld [vmem:[%s4095_s5 + $0x300] sm:$0xff]  ;;  %v1486_v31 = vld [vmem:[%s4095_s5 + $0x308] sm:$0xff]  ;;  %v3717_v27 = vpack.c.bf16 %v1454_v11, %v1453_v5  ;;  %v1456_v7 = vld [vmem:[%s4095_s5 + $0x218] sm:$0xff] }
 0x276   :  { %v1361_v41 = vsub.f32 %v1353_v9, %v697_v47  ;;  %v1363_v42 = vsub.f32 %v1355_v57, %v768_v48  ;;  %v1472_v47 = vld [vmem:[%s4095_s5 + $0x298] sm:$0xff]  ;;  %v3721_v4 = vpack.c.bf16 %v1486_v31, %v1485_v8  ;;  %v1455_v57 = vld [vmem:[%s4095_s5 + $0x210] sm:$0xff]  ;;  %v1457_v8 = vld [vmem:[%s4095_s5 + $0x220] sm:$0xff] }
 0x277   :  { %v1362_v46 = vsub.f32 %v1354_v10, %v699_v52  ;;  %v1364_v61 = vsub.f32 %v1356_v39, %v770_v55  ;;  %v3723_v9 = vpack.c.bf16 %v1472_v47, %v1471_v37  ;;  %v1487_v59 = vld [vmem:[%s4095_s5 + $0x310] sm:$0xff] }
 0x278   :  { %v1373_v6 = vmul.f32 1.442695, %v1361_v41  ;;  %v1377_v3 = vmul.f32 1.442695, %v1363_v42  ;;  %v3736_v41 = vpack.c.bf16 %v1504_v15, %v1503_v2  ;;  %v1488_v42 = vld [vmem:[%s4095_s5 + $0x318] sm:$0xff] }
 0x279   :  { %v1375_v63 = vmul.f32 1.442695, %v1362_v46  ;;  %v1379_v1 = vmul.f32 1.442695, %v1364_v61  ;;  %v1473_v46 = vld [vmem:[%s4095_s5 + $0x2a0] sm:$0xff]  ;;  %v1474_v61 = vld [vmem:[%s4095_s5 + $0x2a8] sm:$0xff]  ;;  %v3760_v5 = vpack.c.bf16 %v1488_v42, %v1487_v59 }
 0x27a   :  { %2956 = vpow2.f32 %v1373_v6  ;;  %v3762_v11 = vpack.c.bf16 %v1474_v61, %v1473_v46 }
 0x27b   :  { %2958 = vpow2.f32 %v1377_v3  ;;  %v1131_v13 = vpop.f32.mrb[14].mxu1  ;;  %v1202_v23 = vpop.f32.mrb[12].mxu0  ;;  %v1505_v3 = vld [vmem:[%s4095_s5 + $0x3a0] sm:$0xff] }
 0x27c   :  { %v2949_v48 = vpop.eup %2948  ;;  %2960 = vpow2.f32 %v1375_v63  ;;  %v1133_v52 = vpop.f32.mrb[15].mxu1  ;;  %v1506_v63 = vld [vmem:[%s4095_s5 + $0x3a8] sm:$0xff] }
 0x27d   :  { %v1204_v55 = vpop.f32.mrb[13].mxu0  ;;  %v2951_v22 = vpop.eup %2950  ;;  %2962 = vpow2.f32 %v1379_v1  ;;  %v3715_v24 = vmul.f32 %v2949_v48, %v1131_v13  ;;  %v3756_v1 = vpack.c.bf16 %v1456_v7, %v1455_v57  ;;  %v1458_v13 = vld [vmem:[%s4095_s5 + $0x228] sm:$0xff]  ;;  %v3774_v47 = vpack.c.bf16 %v1506_v63, %v1505_v3  ;;  %v1508_v57 = vld [vmem:[%s4095_s5 + $0x3b8] sm:$0xff]  ;;  %v1459_v63 = vld [vmem:[%s4095_s5 + $0x230] sm:$0xff] }
 0x27e   :  { %v2953_v28 = vpop.eup %2952  ;;  %v3719_v35 = vmul.f32 %v2951_v22, %v1202_v23  ;;  %v1489_v23 = vld [vmem:[%s4095_s5 + $0x320] sm:$0xff] }
 0x27f   :  { %v2955_v10 = vpop.eup %2954  ;;  %v3734_v39 = vmul.f32 %v2953_v28, %v1133_v52  ;;  %1581 = vmatprep.mubr.f32.mxu1 %v2953_v28  ;;  %v1475_v52 = vld [vmem:[%s4095_s5 + $0x2b0] sm:$0xff] }
 0x280   :  { %v3747_v6 = vmul.f32 %v2955_v10, %v1204_v55  ;;  %1651 = vmatprep.mubr.f32.mxu0 %v2955_v10  ;;  %1582 = vmatmul.mubr.f32.vlgmr.msra.gmra.mrb[18].mxu1 %v2949_v48  ;;  %v1490_v48 = vld [vmem:[%s4095_s5 + $0x328] sm:$0xff]  ;;  %v1476_v55 = vld [vmem:[%s4095_s5 + $0x2b8] sm:$0xff]  ;;  %v1507_v28 = vld [vmem:[%s4095_s5 + $0x3b0] sm:$0xff]  ;;  %v3799_v10 = vpack.c.bf16 %v1458_v13, %v1457_v8 }
 0x281   :  { %1652 = vmatmul.mubr.f32.vlgmr.msra.gmra.mrb[16].mxu0 %v2951_v22  ;;  %2747 = vmatpush3.bf16.msra.mxu1 %v3717_v27  ;;  %v3806_v61 = vpack.c.bf16 %v1490_v48, %v1489_v23  ;;  %v3808_v3 = vpack.c.bf16 %v1476_v55, %v1475_v52  ;;  %v1460_v8 = vld [vmem:[%s4095_s5 + $0x238] sm:$0xff]  ;;  %v1491_v13 = vld [vmem:[%s4095_s5 + $0x330] sm:$0xff]  ;;  %v3822_v23 = vpack.c.bf16 %v1508_v57, %v1507_v28  ;;  %v1477_v52 = vld [vmem:[%s4095_s5 + $0x2c0] sm:$0xff] }
 0x282   :  { %2779 = vmatpush3.bf16.msra.mxu0 %v3721_v4  ;;  %2749 = vmatprep.subr.bf16.mxu1 %v3723_v9  ;;  %4121 = vst [vmem:[#allocation9_spill] sm:$0xff] %v3799_v10  ;;  %v1492_v48 = vld [vmem:[%s4095_s5 + $0x338] sm:$0xff]  ;;  %v1478_v55 = vld [vmem:[%s4095_s5 + $0x2c8] sm:$0xff]  ;;  %v3842_v57 = vpack.c.bf16 %v1460_v8, %v1459_v63  ;;  %v1493_v63 = vld [vmem:[%s4095_s5 + $0x340] sm:$0xff] }
 0x283   :  { %2781 = vmatprep.subr.bf16.mxu0 %v3736_v41  ;;  %v1273_v31 = vpop.f32.mrb[16].mxu1  ;;  %v1344_v37 = vpop.f32.mrb[14].mxu0  ;;  %4123 = vst [vmem:[#allocation11_spill] sm:$0xff] %v3806_v61  ;;  %4124 = vst [vmem:[#allocation12_spill] sm:$0xff] %v3808_v3  ;;  %v1510_v28 = vld [vmem:[%s4095_s5 + $0x3c8] sm:$0xff] }
 0x284   :  { %v3785_v2 = vpop.eup %2956  ;;  %v1275_v15 = vpop.f32.mrb[17].mxu1  ;;  %4125 = vst [vmem:[#allocation13_spill] sm:$0xff] %v3822_v23  ;;  %4126 = vst [vmem:[#allocation14_spill] sm:$0xff] %v3842_v57 }
 0x285   :  { %v1346_v22 = vpop.f32.mrb[15].mxu0  ;;  %v3793_v7 = vpop.eup %2958  ;;  %v3796_v59 = vmul.f32 %v3785_v2, %v1273_v31  ;;  %2751 = vmatpush3.bf16.msra.mxu1 %v3756_v1 }
 0x286   :  { %v2961_v42 = vpop.eup %2960  ;;  %v3802_v46 = vmul.f32 %v3793_v7, %v1344_v37  ;;  %2783 = vmatpush3.bf16.msra.mxu0 %v3760_v5  ;;  %2753 = vmatprep.subr.bf16.mxu1 %v3762_v11 }
 0x287   :  { %4120 = vst [vmem:[#allocation8_spill] sm:$0xff] %v3796_v59  ;;  %v2963_v31 = vpop.eup %2962  ;;  %v3819_v37 = vmul.f32 %v2961_v42, %v1275_v15  ;;  %1721 = vmatprep.mubr.f32.mxu1 %v2961_v42  ;;  %2785 = vmatprep.subr.bf16.mxu0 %v3774_v47  ;;  %v1509_v15 = vld [vmem:[%s4095_s5 + $0x3c0] sm:$0xff]  ;;  %v3846_v42 = vpack.c.bf16 %v1492_v48, %v1491_v13  ;;  %v1462_v59 = vld [vmem:[%s4095_s5 + $0x248] sm:$0xff]  ;;  %v1479_v48 = vld [vmem:[%s4095_s5 + $0x2d0] sm:$0xff] }
 0x288   :  { %4122 = vst [vmem:[#allocation10_spill] sm:$0xff] %v3802_v46  ;;  %v3833_v46 = vmul.f32 %v2963_v31, %v1346_v22  ;;  %1791 = vmatprep.mubr.f32.mxu0 %v2963_v31  ;;  %v3848_v22 = vpack.c.bf16 %v1478_v55, %v1477_v52  ;;  %v1461_v31 = vld [vmem:[%s4095_s5 + $0x240] sm:$0xff]  ;;  %v3860_v8 = vpack.c.bf16 %v1510_v28, %v1509_v15  ;;  %v1494_v13 = vld [vmem:[%s4095_s5 + $0x348] sm:$0xff]  ;;  %v1480_v52 = vld [vmem:[%s4095_s5 + $0x2d8] sm:$0xff] }
 0x289   :  { %2755 = vmatpush3.bf16.msra.mxu1 %v3799_v10  ;;  %4127 = vst [vmem:[#allocation15_spill] sm:$0xff] %v3846_v42  ;;  %v1511_v55 = vld [vmem:[%s4095_s5 + $0x3d0] sm:$0xff]  ;;  %v1512_v15 = vld [vmem:[%s4095_s5 + $0x3d8] sm:$0xff]  ;;  %v3878_v28 = vpack.c.bf16 %v1462_v59, %v1461_v31 }
 0x28a   :  { %2787 = vmatpush3.bf16.msra.mxu0 %v3806_v61  ;;  %2757 = vmatprep.subr.bf16.mxu1 %v3808_v3  ;;  %4128 = vst [vmem:[#allocation16_spill] sm:$0xff] %v3848_v22  ;;  %4129 = vst [vmem:[#allocation17_spill] sm:$0xff] %v3860_v8  ;;  %v3884_v3 = vpack.c.bf16 %v1480_v52, %v1479_v48  ;;  %v1463_v61 = vld [vmem:[%s4095_s5 + $0x250] sm:$0xff]  ;;  %v1464_v10 = vld [vmem:[%s4095_s5 + $0x258] sm:$0xff]  ;;  %v3896_v31 = vpack.c.bf16 %v1512_v15, %v1511_v55 }
 0x28b   :  { %2789 = vmatprep.subr.bf16.mxu0 %v3822_v23  ;;  %4130 = vst [vmem:[#allocation18_spill] sm:$0xff] %v3878_v28  ;;  %v3882_v23 = vpack.c.bf16 %v1494_v13, %v1493_v63  ;;  %v1495_v59 = vld [vmem:[%s4095_s5 + $0x350] sm:$0xff]  ;;  %v1496_v63 = vld [vmem:[%s4095_s5 + $0x358] sm:$0xff]  ;;  %v1481_v13 = vld [vmem:[%s4095_s5 + $0x2e0] sm:$0xff]  ;;  %v3914_v15 = vpack.c.bf16 %v1464_v10, %v1463_v61 }
 0x28c   :  { %4132 = vst [vmem:[#allocation20_spill] sm:$0xff] %v3884_v3  ;;  %4133 = vst [vmem:[#allocation21_spill] sm:$0xff] %v3896_v31  ;;  %v1482_v48 = vld [vmem:[%s4095_s5 + $0x2e8] sm:$0xff]  ;;  %v1513_v52 = vld [vmem:[%s4095_s5 + $0x3e0] sm:$0xff] }
 0x28d   :  { %2759 = vmatpush3.bf16.msra.mxu1 %v3842_v57  ;;  %4131 = vst [vmem:[#allocation19_spill] sm:$0xff] %v3882_v23  ;;  %v1514_v55 = vld [vmem:[%s4095_s5 + $0x3e8] sm:$0xff]  ;;  %v1497_v10 = vld [vmem:[%s4095_s5 + $0x360] sm:$0xff] }
 0x28e   :  { %2791 = vmatpush3.bf16.msra.mxu0 %v3846_v42  ;;  %2761 = vmatprep.subr.bf16.mxu1 %v3848_v22  ;;  %v3920_v22 = vpack.c.bf16 %v1482_v48, %v1481_v13  ;;  %v1465_v42 = vld [vmem:[%s4095_s5 + $0x260] sm:$0xff]  ;;  %v1466_v57 = vld [vmem:[%s4095_s5 + $0x268] sm:$0xff]  ;;  %v3932_v61 = vpack.c.bf16 %v1514_v55, %v1513_v52  ;;  %v1484_v13 = vld [vmem:[%s4095_s5 + $0x2f8] sm:$0xff] }
 0x28f   :  { %2793 = vmatprep.subr.bf16.mxu0 %v3860_v8  ;;  %v3918_v8 = vpack.c.bf16 %v1496_v63, %v1495_v59  ;;  %v1498_v59 = vld [vmem:[%s4095_s5 + $0x368] sm:$0xff]  ;;  %v1483_v63 = vld [vmem:[%s4095_s5 + $0x2f0] sm:$0xff]  ;;  %v1516_v52 = vld [vmem:[%s4095_s5 + $0x3f8] sm:$0xff]  ;;  %v3950_v55 = vpack.c.bf16 %v1466_v57, %v1465_v42 }
 0x290   :  { %v1515_v48 = vld [vmem:[%s4095_s5 + $0x3f0] sm:$0xff] }
 0x291   :  { %2763 = vmatpush3.bf16.msra.mxu1 %v3878_v28  ;;  %v1468_v28 = vld [vmem:[%s4095_s5 + $0x278] sm:$0xff]  ;;  %v3965_v57 = vpack.c.bf16 %v1516_v52, %v1515_v48  ;;  %v1499_v42 = vld [vmem:[%s4095_s5 + $0x370] sm:$0xff]  ;;  %v2196_v52 = vld [vmem:[%s4097_s7] ss:$0 sm:$0xff] }
 0x292   :  { %2795 = vmatpush3.bf16.msra.mxu0 %v3882_v23  ;;  %2765 = vmatprep.subr.bf16.mxu1 %v3884_v3  ;;  %v3956_v3 = vpack.c.bf16 %v1484_v13, %v1483_v63  ;;  %v1467_v23 = vld [vmem:[%s4095_s5 + $0x270] sm:$0xff] }
 0x293   :  { %2797 = vmatprep.subr.bf16.mxu0 %v3896_v31  ;;  %v3954_v31 = vpack.c.bf16 %v1498_v59, %v1497_v10  ;;  %v1500_v10 = vld [vmem:[%s4095_s5 + $0x378] sm:$0xff]  ;;  %v3974_v59 = vpack.c.bf16 %v1468_v28, %v1467_v23 }
 0x294   :  { %v3978_v63 = vpack.c.bf16 %v1500_v10, %v1499_v42 }
 0x295   :  { %2767 = vmatpush3.bf16.msra.mxu1 %v3914_v15 }
 0x296   :  { %2799 = vmatpush3.bf16.msra.mxu0 %v3918_v8  ;;  %2769 = vmatprep.subr.bf16.mxu1 %v3920_v22 }
 0x297   :  { %2801 = vmatprep.subr.bf16.mxu0 %v3932_v61 }
 0x299   :  { %2771 = vmatpush3.bf16.msra.mxu1 %v3950_v55 }
 0x29a   :  { %2803 = vmatpush3.bf16.msra.mxu0 %v3954_v31  ;;  %2773 = vmatprep.subr.bf16.mxu1 %v3956_v3 }
 0x29b   :  { %2805 = vmatprep.subr.bf16.mxu0 %v3965_v57 }
 0x29d   :  { %2775 = vmatpush3.bf16.msra.mxu1 %v3974_v59 }
 0x29e   :  { %2807 = vmatpush3.bf16.msra.mxu0 %v3978_v63  ;;  %2809 = vmatprep.subr.bf16.mxu1 %v3386_v18  ;;  %v4134_v18 = vld [vmem:[#allocation5_spill] sm:$0xff] }
 0x29f   :  { %2841 = vmatprep.subr.bf16.mxu0 %v3397_v20  ;;  %v4135_v20 = vld [vmem:[#allocation6_spill] sm:$0xff] }
 0x2a0   :  { %1722 = vmatmul.mubr.f32.vlgmr.msra.gmra.mrb[20].mxu1 %v3785_v2 }
 0x2a1   :  { %1792 = vmatmul.mubr.f32.vlgmr.msra.gmra.mrb[18].mxu0 %v3793_v7  ;;  %2811 = vmatpush3.bf16.msra.mxu1 %v3399_v21  ;;  %v4136_v21 = vld [vmem:[#allocation7_spill] sm:$0xff] }
 0x2a2   :  { %1861 = vmatprep.mubr.f32.mxu1 %v3734_v39  ;;  %2843 = vmatpush3.bf16.msra.mxu0 %v3411_v25  ;;  %v4137_v25 = vld [vmem:[#allocation9_spill] sm:$0xff] }
 0x2a3   :  { %1931 = vmatprep.mubr.f32.mxu0 %v3747_v6  ;;  %2813 = vmatprep.subr.bf16.mxu1 %v3424_v29  ;;  %v4138_v29 = vld [vmem:[#allocation11_spill] sm:$0xff] }
 0x2a4   :  { %2845 = vmatprep.subr.bf16.mxu0 %v3426_v30  ;;  %v4139_v30 = vld [vmem:[#allocation12_spill] sm:$0xff] }
 0x2a5   :  { %2815 = vmatpush3.bf16.msra.mxu1 %v3440_v34  ;;  %v4140_v34 = vld [vmem:[#allocation13_spill] sm:$0xff] }
 0x2a6   :  { %2847 = vmatpush3.bf16.msra.mxu0 %v3445_v36  ;;  %2817 = vmatprep.subr.bf16.mxu1 %v3458_v40  ;;  %v4141_v36 = vld [vmem:[#allocation14_spill] sm:$0xff]  ;;  %v4142_v40 = vld [vmem:[#allocation15_spill] sm:$0xff] }
 0x2a7   :  { %2849 = vmatprep.subr.bf16.mxu0 %v3469_v44  ;;  %v4143_v44 = vld [vmem:[#allocation16_spill] sm:$0xff] }
 0x2a9   :  { %2819 = vmatpush3.bf16.msra.mxu1 %v3471_v45  ;;  %v4144_v45 = vld [vmem:[#allocation17_spill] sm:$0xff] }
 0x2aa   :  { %2851 = vmatpush3.bf16.msra.mxu0 %v3483_v49  ;;  %2821 = vmatprep.subr.bf16.mxu1 %v3496_v53  ;;  %v4145_v49 = vld [vmem:[#allocation18_spill] sm:$0xff]  ;;  %v4146_v53 = vld [vmem:[#allocation19_spill] sm:$0xff] }
 0x2ab   :  { %2853 = vmatprep.subr.bf16.mxu0 %v3498_v54  ;;  %v4147_v54 = vld [vmem:[#allocation20_spill] sm:$0xff] }
 0x2ad   :  { %2823 = vmatpush3.bf16.msra.mxu1 %v3512_v58  ;;  %v4148_v58 = vld [vmem:[#allocation21_spill] sm:$0xff] }
 0x2ae   :  { %2855 = vmatpush3.bf16.msra.mxu0 %v3517_v60  ;;  %2825 = vmatprep.subr.bf16.mxu1 %v3530_v0  ;;  %v4149_v60 = vmov 0.0|0.0   ;;  %v4150_v0 = vld [vmem:[#allocation8_spill] sm:$0xff] }
 0x2af   :  { %2857 = vmatprep.subr.bf16.mxu0 %v3541_v16  ;;  %v4151_v16 = vld [vmem:[#allocation10_spill] sm:$0xff] }
 0x2b1   :  { %2827 = vmatpush3.bf16.msra.mxu1 %v3543_v17  ;;  %v4152_v17 = vmov 0.0  }
 0x2b2   :  { %2859 = vmatpush3.bf16.msra.mxu0 %v3552_v19  ;;  %2829 = vmatprep.subr.bf16.mxu1 %v3566_v26  ;;  %v2079_v19 = vld [vmem:[%s4096_s6] sm:$0xff]  ;;  %v2080_v26 = vld [vmem:[%s4096_s6 + $0x8] sm:$0xff] }
 0x2b3   :  { %2861 = vmatprep.subr.bf16.mxu0 %v3577_v32  ;;  %v2937_v32 = vpack.c.bf16 %v2080_v26, %v2079_v19 }
 0x2b5   :  { %2831 = vmatpush3.bf16.msra.mxu1 %v3579_v33  ;;  %v2081_v33 = vld [vmem:[%s4096_s6 + $0x10] sm:$0xff] }
 0x2b6   :  { %2863 = vmatpush3.bf16.msra.mxu0 %v3588_v38  ;;  %2833 = vmatprep.subr.bf16.mxu1 %v3602_v43  ;;  %v2082_v38 = vld [vmem:[%s4096_s6 + $0x18] sm:$0xff] }
 0x2b7   :  { %2865 = vmatprep.subr.bf16.mxu0 %v3613_v50  ;;  %v2940_v43 = vpack.c.bf16 %v2082_v38, %v2081_v33 }
 0x2b9   :  { %2835 = vmatpush3.bf16.msra.mxu1 %v3615_v51 }
 0x2ba   :  { %2867 = vmatpush3.bf16.msra.mxu0 %v3624_v56  ;;  %2837 = vmatprep.subr.bf16.mxu1 %v3638_v62 }
 0x2bb   :  { %2869 = vmatprep.subr.bf16.mxu0 %v3649_v14 }
 0x2bd   :  { %2839 = vmatpush3.bf16.msra.mxu1 %v3651_v12 }
 0x2be   :  { %2871 = vmatpush3.bf16.msra.mxu0 %v4134_v18  ;;  %2873 = vmatprep.subr.bf16.mxu1 %v4135_v20 }
 0x2bf   :  { %2905 = vmatprep.subr.bf16.mxu0 %v4136_v21 }
 0x2c0   :  { %1862 = vmatmul.mubr.f32.vlgmr.msra.gmra.mrb[22].mxu1 %v3715_v24 }
 0x2c1   :  { %1932 = vmatmul.mubr.f32.vlgmr.msra.gmra.mrb[20].mxu0 %v3719_v35  ;;  %2875 = vmatpush3.bf16.msra.mxu1 %v3717_v27 }
 0x2c2   :  { %2001 = vmatprep.mubr.f32.mxu1 %v3819_v37  ;;  %2907 = vmatpush3.bf16.msra.mxu0 %v3721_v4 }
 0x2c3   :  { %2071 = vmatprep.mubr.f32.mxu0 %v3833_v46  ;;  %2877 = vmatprep.subr.bf16.mxu1 %v3723_v9 }
 0x2c4   :  { %2909 = vmatprep.subr.bf16.mxu0 %v3736_v41 }
 0x2c5   :  { %2879 = vmatpush3.bf16.msra.mxu1 %v3756_v1 }
 0x2c6   :  { %2911 = vmatpush3.bf16.msra.mxu0 %v3760_v5  ;;  %2881 = vmatprep.subr.bf16.mxu1 %v3762_v11 }
 0x2c7   :  { %2913 = vmatprep.subr.bf16.mxu0 %v3774_v47 }
 0x2c9   :  { %2883 = vmatpush3.bf16.msra.mxu1 %v4137_v25 }
 0x2ca   :  { %2915 = vmatpush3.bf16.msra.mxu0 %v4138_v29  ;;  %2885 = vmatprep.subr.bf16.mxu1 %v4139_v30 }
 0x2cb   :  { %2917 = vmatprep.subr.bf16.mxu0 %v4140_v34 }
 0x2cd   :  { %2887 = vmatpush3.bf16.msra.mxu1 %v4141_v36 }
 0x2ce   :  { %2919 = vmatpush3.bf16.msra.mxu0 %v4142_v40  ;;  %2889 = vmatprep.subr.bf16.mxu1 %v4143_v44 }
 0x2cf   :  { %2921 = vmatprep.subr.bf16.mxu0 %v4144_v45 }
 0x2d1   :  { %2891 = vmatpush3.bf16.msra.mxu1 %v4145_v49 }
 0x2d2   :  { %2923 = vmatpush3.bf16.msra.mxu0 %v4146_v53  ;;  %2893 = vmatprep.subr.bf16.mxu1 %v4147_v54 }
 0x2d3   :  { %2925 = vmatprep.subr.bf16.mxu0 %v4148_v58 }
 0x2d5   :  { %2895 = vmatpush3.bf16.msra.mxu1 %v3914_v15 }
 0x2d6   :  { %2927 = vmatpush3.bf16.msra.mxu0 %v3918_v8  ;;  %2897 = vmatprep.subr.bf16.mxu1 %v3920_v22 }
 0x2d7   :  { %2929 = vmatprep.subr.bf16.mxu0 %v3932_v61 }
 0x2d9   :  { %2899 = vmatpush3.bf16.msra.mxu1 %v3950_v55 }
 0x2da   :  { %2931 = vmatpush3.bf16.msra.mxu0 %v3954_v31  ;;  %2901 = vmatprep.subr.bf16.mxu1 %v3956_v3 }
 0x2db   :  { %2933 = vmatprep.subr.bf16.mxu0 %v3965_v57 }
 0x2dd   :  { %2903 = vmatpush3.bf16.msra.mxu1 %v3974_v59 }
 0x2de   :  { %2935 = vmatpush3.bf16.msra.mxu0 %v3978_v63  ;;  %2936 = vmatprep.subr.bf16.mxu1 %v4149_v60 }
 0x2e0   :  { %2002 = vmatmul.mubr.f32.vlgmr.msra.gmra.mrb[24].mxu1 %v4150_v0 }
 0x2e1   :  { %2072 = vmatmul.mubr.f32.vlgmr.msra.gmra.mrb[22].mxu0 %v4151_v16  ;;  %2531 = vmatprep.mubr.msk.f32.mxu1 %vm2991_vm0, %v4152_v17 }
 0x2e2   :  { %2938 = vmatpush3.bf16.msra.mxu1 %v2937_v32 }
 0x2e3   :  { %2939 = vmatprep.subr.bf16.mxu1 %v4149_v60 }
 0x2e6   :  { %2941 = vmatpush3.bf16.msra.mxu1 %v2940_v43 }
 0x353   :  { %v2243_v50 = vpop.f32.mrb[18].mxu1 }
 0x354   :  { %v2278_v51 = vpop.f32.mrb[16].mxu0  ;;  %v2244_v56 = vpop.f32.mrb[19].mxu1 }
 0x355   :  { %v2245_v62 = vadd.f32 %v2244_v56, %v2243_v50  ;;  %v2279_v14 = vpop.f32.mrb[17].mxu0 }
 0x356   :  { %v2280_v12 = vadd.f32 %v2279_v14, %v2278_v51 }
 0x358   :  { %v1654_v24 = vadd.f32 %v2280_v12, %v2245_v62 }
 0x373   :  { %v2313_v27 = vpop.f32.mrb[20].mxu1 }
 0x374   :  { %v2348_v35 = vpop.f32.mrb[18].mxu0  ;;  %v2314_v4 = vpop.f32.mrb[21].mxu1 }
 0x375   :  { %v2315_v9 = vadd.f32 %v2314_v4, %v2313_v27  ;;  %v2349_v39 = vpop.f32.mrb[19].mxu0 }
 0x376   :  { %v2350_v41 = vadd.f32 %v2349_v39, %v2348_v35 }
 0x377   :  { %v1724_v6 = vadd.f32 %v2315_v9, %v1654_v24 }
 0x379   :  { %v1794_v1 = vadd.f32 %v2350_v41, %v1724_v6 }
 0x37b   :  { %2964 = vrcp.f32 %v1794_v1 }
 0x385   :  { %v2965_v13 = vpop.eup %2964 }
 0x393   :  { %v2383_v5 = vpop.f32.mrb[22].mxu1 }
 0x394   :  { %v2418_v11 = vpop.f32.mrb[20].mxu0  ;;  %v2384_v47 = vpop.f32.mrb[23].mxu1 }
 0x395   :  { %v2385_v2 = vadd.f32 %v2384_v47, %v2383_v5  ;;  %v2419_v7 = vpop.f32.mrb[21].mxu0 }
 0x396   :  { %v2420_v46 = vadd.f32 %v2419_v7, %v2418_v11 }
 0x398   :  { %v1934_v3 = vadd.f32 %v2420_v46, %v2385_v2 }
 0x3b3   :  { %v2453_v37 = vpop.f32.mrb[24].mxu1 }
 0x3b4   :  { %v2488_v23 = vpop.f32.mrb[22].mxu0  ;;  %v2454_v22 = vpop.f32.mrb[25].mxu1 }
 0x3b5   :  { %v2455_v8 = vadd.f32 %v2454_v22, %v2453_v37  ;;  %v2489_v28 = vpop.f32.mrb[23].mxu0 }
 0x3b6   :  { %v2490_v31 = vadd.f32 %v2489_v28, %v2488_v23 }
 0x3b7   :  { %v2004_v15 = vadd.f32 %v2455_v8, %v1934_v3 }
 0x3b9   :  { %v2074_v61 = vadd.f32 %v2490_v31, %v2004_v15 }
 0x3bb   :  { %v2078_v48 = vmul.f32 %v2965_v13, %v2074_v61 }
 0x3bd   :  { %2532 = vmatmul.mubr.msk.f32.vlgmr.msra.gmra.mrb[26].mxu1 %vm198_vm2, %v2078_v48 }
 0x490   :  { %v2159_v55 = vpop.f32.mrb[26].mxu1 }
 0x491   :  { %v2160_v57 = vadd.f32 %v2196_v52, %v2159_v55  ;;  %v2533_v42 = vpop.f32.mrb[27].mxu1 }
 0x493   :  { %2163 = vst.msk [vmem:[#allocation2] sm:$0xff] %vm198_vm2, %v2160_v57 }
 0x494   :  { %2977 = shalt.err (!%p2974_p4)
}
 0x495   :  { %s2978_s14 = scalar_lea.hbm %s4098_s8, 128 }
 0x496   :  { %p2979_p5 = scmp.ne.s32.totalorder %s4098_s8, %s2978_s14  ;;  %p2982_p6 = scmp.lt.u32.totalorder %s2978_s14, %s4098_s8 }
 0x498   :  { %p2984_p7 = pnand %p2982_p6, %p2979_p5 }
 0x49a   :  { %2987 = shalt.err (!%p2984_p7)
}
 0x49b   :  { %2173 = dma.vmem_to_hbm [thread:$0]  %s2171_s10, 128, %s4098_s8, [#allocation3]  }
 0x49c   :  { %2988 = dma.done.wait [#allocation3], 128  }
 0x49d   :  { %2989 = vsyncadd [#allocation3], 4294967168 }
 0x49e   :  { %2177 = vsyncpa [#allocation3], 1 }

</bundles_post_ra>
